<compile_context>
chip_gen: v5e
topology: v5e:2x2
jax: 0.10.0
libtpu: 0.0.40
codegen_flags: <defaults>
</compile_context>

<pallas_src>
import jax
import jax.numpy as jnp
from jax.experimental import pallas as pl
from jax.experimental.pallas import tpu as pltpu


def _round_up(n, m):
    return ((n + m - 1) // m) * m


def dqn_forward_kernel(x_ref, w1t_ref, b1_ref, w2t_ref, b2_ref, o_ref, xpad_ref):
    """out = relu(x @ W1^T + b1) @ W2^T + b2 for one batch tile.

    x_ref   : (tb, obs)      fp32/bf16 states (unpadded lanes)
    w1t_ref : (obs_p, hid_p) bf16 pre-transposed, zero-padded W1
    b1_ref  : (1, hid_p)     fp32 bias (padded lanes are zero)
    w2t_ref : (hid_p, act)   bf16 pre-transposed W2 (padded K rows are zero)
    b2_ref  : (1, act)       fp32 bias
    o_ref   : (tb, act)      fp32 Q-values
    xpad_ref: (tb, obs_p)    fp32 VMEM staging buffer (lane pad obs -> obs_p)
    """
    obs = x_ref.shape[-1]
    # Stage x into a 128-lane-aligned buffer.  Zero first so the pad lanes are
    # exact zeros on every grid step (safe under megacore grid sharding), then
    # overwrite the valid lanes.  Both stores are cheap VMEM-only traffic.
    xpad_ref[...] = jnp.zeros_like(xpad_ref)
    xpad_ref[:, :obs] = x_ref[...].astype(xpad_ref.dtype)

    x = xpad_ref[...].astype(jnp.bfloat16)                     # MXU operand
    h = jnp.dot(x, w1t_ref[...], preferred_element_type=jnp.float32)
    h = jnp.maximum(h + b1_ref[...], 0.0)                      # fp32 epilogue (VPU)
    y = jnp.dot(h.astype(jnp.bfloat16), w2t_ref[...],
                preferred_element_type=jnp.float32)
    # NOTE: for a pure "acting" path this could emit bf16 Q-values or a fused
    # argmax over the valid lanes to trim output HBM traffic further; fp32
    # Q-values are kept here to match the module's forward() semantics.
    o_ref[...] = (y + b2_ref[...]).astype(o_ref.dtype)


def prepare_dqn_params(w1, b1, w2, b2, weight_dtype=jnp.bfloat16):
    """One-time parameter prep: transpose, zero-pad K dims to 128 multiples, cast.

    w1 : (hidden, obs), b1 : (hidden,)
    w2 : (act, hidden), b2 : (act,)
    Only contraction dims (obs, hidden) are padded; the action dim is left
    unpadded so the kernel writes an exact (B, act) output.
    """
    hidden, obs = w1.shape
    act = w2.shape[0]
    obs_p = _round_up(obs, 128)
    hid_p = _round_up(hidden, 128)

    w1t = jnp.zeros((obs_p, hid_p), weight_dtype)
    w1t = w1t.at[:obs, :hidden].set(w1.T.astype(weight_dtype))
    b1p = jnp.zeros((1, hid_p), jnp.float32).at[0, :hidden].set(b1.astype(jnp.float32))

    w2t = jnp.zeros((hid_p, act), weight_dtype)
    w2t = w2t.at[:hidden, :].set(w2.T.astype(weight_dtype))
    b2p = b2.astype(jnp.float32).reshape(1, act)

    return (w1t, b1p, w2t, b2p)


def _choose_batch_tile(batch, max_tile):
    """Pick (tile, num_steps): tile <= max_tile, multiple of 8, sized to the
    batch (no padding waste), and >= 2 grid steps whenever the batch is big
    enough to split (so v7x's two TensorCores both get work)."""
    n_steps = max(2, pl.cdiv(batch, max_tile))
    tb = _round_up(pl.cdiv(batch, n_steps), 8)
    if tb >= batch:
        # Too small to split into 8-row-aligned blocks: one full-batch block
        # (full-dim blocks are exempt from the 8-row alignment rule).
        return batch, 1
    return tb, pl.cdiv(batch, tb)


def dqn_forward(x, params, max_batch_tile=1024):
    """Run the fused DQN forward on a (B, obs) batch (or a single (obs,) state)."""
    w1t, b1p, w2t, b2p = params
    obs_p, hid_p = w1t.shape
    act = w2t.shape[1]

    x = jnp.asarray(x)
    squeeze = (x.ndim == 1)
    if squeeze:
        x = x[None, :]
    if x.dtype not in (jnp.float32, jnp.bfloat16):
        x = x.astype(jnp.float32)
    B, obs = x.shape

    tb, steps = _choose_batch_tile(B, max_batch_tile)

    out = pl.pallas_call(
        dqn_forward_kernel,
        out_shape=jax.ShapeDtypeStruct((B, act), jnp.float32),
        grid=(steps,),
        in_specs=[
            pl.BlockSpec((tb, obs), lambda i: (i, 0)),        # batch tile of states
            pl.BlockSpec((obs_p, hid_p), lambda i: (0, 0)),   # W1^T resident
            pl.BlockSpec((1, hid_p), lambda i: (0, 0)),       # b1 resident
            pl.BlockSpec((hid_p, act), lambda i: (0, 0)),     # W2^T resident
            pl.BlockSpec((1, act), lambda i: (0, 0)),         # b2 resident
        ],
        out_specs=pl.BlockSpec((tb, act), lambda i: (i, 0)),
        scratch_shapes=[pltpu.VMEM((tb, obs_p), jnp.float32)],
        compiler_params=pltpu.CompilerParams(
            dimension_semantics=("parallel",)),
    )(x, w1t, b1p, w2t, b2p)

    return out[0] if squeeze else out


def dqn_forward_ref(x, w1, b1, w2, b2):
    """Pure-JAX fp32 reference identical to the PyTorch forward."""
    h = jnp.maximum(x @ w1.T + b1, 0.0)
    return h @ w2.T + b2


if __name__ == "__main__":
    # Module shapes: DQN(observation_space=121, action_space=121, hidden=256)
    # (121 = 11*11 board, per get_valid_action).
    B = 8
    observation_space = 121
    hidden = 256
    action_space = 121

    key = jax.random.PRNGKey(0)
    k_x, k_w1, k_b1, k_w2, k_b2, k_xl = jax.random.split(key, 6)

    # Deterministic synthetic parameters (PyTorch-Linear-like uniform init).
    lim1 = 1.0 / (observation_space ** 0.5)
    lim2 = 1.0 / (hidden ** 0.5)
    x = jax.random.normal(k_x, (B, observation_space), dtype=jnp.float32)
    w1 = jax.random.uniform(k_w1, (hidden, observation_space), jnp.float32, -lim1, lim1)
    b1 = jax.random.uniform(k_b1, (hidden,), jnp.float32, -lim1, lim1)
    w2 = jax.random.uniform(k_w2, (action_space, hidden), jnp.float32, -lim2, lim2)
    b2 = jax.random.uniform(k_b2, (action_space,), jnp.float32, -lim2, lim2)

    # One-time parameter prep (transpose + pad + bf16 cast) outside the hot path.
    params = prepare_dqn_params(w1, b1, w2, b2)

    # Small-batch (acting-style) check: single grid step, full-batch block.
    out = jax.block_until_ready(dqn_forward(x, params))
    ref = dqn_forward_ref(x, w1, b1, w2, b2)
    assert out.shape == (B, action_space)
    # bf16 matmul operands => loosened tolerance vs fp32 reference.
    assert jnp.allclose(out, ref, atol=2e-2, rtol=2e-2), "mismatch vs reference (small batch)"

    # Larger, non-tile-aligned batch: exercises the 2-step parallel grid
    # (136 + 124 rows) and the masked partial last block -- no batch padding.
    BL = 260
    xl = jax.random.normal(k_xl, (BL, observation_space), dtype=jnp.float32)
    out_l = jax.block_until_ready(dqn_forward(xl, params))
    ref_l = dqn_forward_ref(xl, w1, b1, w2, b2)
    assert out_l.shape == (BL, action_space)
    assert jnp.allclose(out_l, ref_l, atol=2e-2, rtol=2e-2), "mismatch vs reference (large batch)"

    # TODO(synk): get_valid_action (UCB selection over mutable numpy
    # action_counts/state_visits plus board masking) is host-side control flow,
    # not part of the forward kernel.
    print("KERNEL_OK")
</pallas_src>

<mosaic_0001>
module attributes {stable_mosaic.version = 11 : i64} {
  func.func @dqn_forward_kernel(%arg0: i32, %arg1: memref<8x121xf32, #tpu.memory_space<vmem>>, %arg2: memref<128x256xbf16, #tpu.memory_space<vmem>>, %arg3: memref<1x256xf32, #tpu.memory_space<vmem>>, %arg4: memref<256x121xbf16, #tpu.memory_space<vmem>>, %arg5: memref<1x121xf32, #tpu.memory_space<vmem>>, %arg6: memref<8x121xf32, #tpu.memory_space<vmem>>, %arg7: memref<8x128xf32, #tpu.memory_space<vmem>>) attributes {dimension_semantics = [#tpu.dimension_semantics<parallel>], iteration_bounds = array<i64: 1>, scalar_prefetch = 0 : i64, scratch_operands = 1 : i64, tpu.core_type = #tpu.core_type<tc>, window_params = [{transform_indices = @transform_0, window_bounds = array<i64: 8, 121>}, {pipeline_mode = #tpu.pipeline_mode<synchronous>, transform_indices = @transform_1, window_bounds = array<i64: 128, 256>}, {pipeline_mode = #tpu.pipeline_mode<synchronous>, transform_indices = @transform_2, window_bounds = array<i64: 1, 256>}, {pipeline_mode = #tpu.pipeline_mode<synchronous>, transform_indices = @transform_3, window_bounds = array<i64: 256, 121>}, {pipeline_mode = #tpu.pipeline_mode<synchronous>, transform_indices = @transform_4, window_bounds = array<i64: 1, 121>}, {transform_indices = @transform_5, window_bounds = array<i64: 8, 121>}]} {
    %cst = arith.constant 0.000000e+00 : f32
    %0 = vector.broadcast %cst : f32 to vector<8x128xf32>
    %c0 = arith.constant 0 : index
    %c0_0 = arith.constant 0 : index
    %1 = vector.load %arg7[%c0, %c0_0] : memref<8x128xf32, #tpu.memory_space<vmem>>, vector<8x128xf32>
    tpu.vector_store %arg7[%c0, %c0_0], %0 {strides = array<i32>} : memref<8x128xf32, #tpu.memory_space<vmem>>, vector<8x128xf32>,
    %c0_1 = arith.constant 0 : index
    %c0_2 = arith.constant 0 : index
    %2 = vector.load %arg1[%c0_1, %c0_2] : memref<8x121xf32, #tpu.memory_space<vmem>>, vector<8x121xf32>
    %c0_3 = arith.constant 0 : index
    %c0_4 = arith.constant 0 : index
    %3 = vector.load %arg7[%c0_3, %c0_4] : memref<8x128xf32, #tpu.memory_space<vmem>>, vector<8x121xf32>
    tpu.vector_store %arg7[%c0_3, %c0_4], %2 {strides = array<i32>} : memref<8x128xf32, #tpu.memory_space<vmem>>, vector<8x121xf32>,
    %c0_5 = arith.constant 0 : index
    %c0_6 = arith.constant 0 : index
    %4 = vector.load %arg7[%c0_5, %c0_6] : memref<8x128xf32, #tpu.memory_space<vmem>>, vector<8x128xf32>
    %5 = arith.truncf %4 : vector<8x128xf32> to vector<8x128xbf16>
    %c0_7 = arith.constant 0 : index
    %c0_8 = arith.constant 0 : index
    %6 = vector.load %arg2[%c0_7, %c0_8] : memref<128x256xbf16, #tpu.memory_space<vmem>>, vector<128x256xbf16>
    %cst_9 = arith.constant dense<0.000000e+00> : vector<8x256xf32>
    %7 = tpu.matmul %5, %6, %cst_9 {dimension_numbers = #tpu.dot_dimension_numbers<[1], [0], [0], [1], [0, 0, 1, 1], [], []>} : vector<8x128xbf16>, vector<128x256xbf16>, vector<8x256xf32> -> vector<8x256xf32>
    %c0_10 = arith.constant 0 : index
    %c0_11 = arith.constant 0 : index
    %8 = vector.load %arg3[%c0_10, %c0_11] : memref<1x256xf32, #tpu.memory_space<vmem>>, vector<1x256xf32>
    %9 = vector.broadcast %8 : vector<1x256xf32> to vector<8x256xf32>
    %10 = arith.addf %7, %9 : vector<8x256xf32>
    %cst_12 = arith.constant 0.000000e+00 : f32
    %11 = vector.broadcast %cst_12 : f32 to vector<8x256xf32>
    %12 = arith.maximumf %10, %11 : vector<8x256xf32>
    %13 = arith.truncf %12 : vector<8x256xf32> to vector<8x256xbf16>
    %c0_13 = arith.constant 0 : index
    %c0_14 = arith.constant 0 : index
    %14 = vector.load %arg4[%c0_13, %c0_14] : memref<256x121xbf16, #tpu.memory_space<vmem>>, vector<256x121xbf16>
    %cst_15 = arith.constant dense<0.000000e+00> : vector<8x121xf32>
    %15 = tpu.matmul %13, %14, %cst_15 {dimension_numbers = #tpu.dot_dimension_numbers<[1], [0], [0], [1], [0, 0, 1, 1], [], []>} : vector<8x256xbf16>, vector<256x121xbf16>, vector<8x121xf32> -> vector<8x121xf32>
    %c0_16 = arith.constant 0 : index
    %c0_17 = arith.constant 0 : index
    %16 = vector.load %arg5[%c0_16, %c0_17] : memref<1x121xf32, #tpu.memory_space<vmem>>, vector<1x121xf32>
    %17 = vector.broadcast %16 : vector<1x121xf32> to vector<8x121xf32>
    %18 = arith.addf %15, %17 : vector<8x121xf32>
    %c0_18 = arith.constant 0 : index
    %c0_19 = arith.constant 0 : index
    %19 = vector.load %arg6[%c0_18, %c0_19] : memref<8x121xf32, #tpu.memory_space<vmem>>, vector<8x121xf32>
    tpu.vector_store %arg6[%c0_18, %c0_19], %18 {strides = array<i32>} : memref<8x121xf32, #tpu.memory_space<vmem>>, vector<8x121xf32>,
    return
  }
  func.func @transform_0(%arg0: i32) -> (i32, i32) {
    %c0_i32 = arith.constant 0 : i32
    %c0_i32_0 = arith.constant 0 : i32
    return %arg0, %c0_i32 : i32, i32
  }
  func.func @transform_1(%arg0: i32) -> (i32, i32) {
    %c0_i32 = arith.constant 0 : i32
    %c0_i32_0 = arith.constant 0 : i32
    %c0_i32_1 = arith.constant 0 : i32
    return %c0_i32, %c0_i32_0 : i32, i32
  }
  func.func @transform_2(%arg0: i32) -> (i32, i32) {
    %c0_i32 = arith.constant 0 : i32
    %c0_i32_0 = arith.constant 0 : i32
    %c0_i32_1 = arith.constant 0 : i32
    return %c0_i32, %c0_i32_0 : i32, i32
  }
  func.func @transform_3(%arg0: i32) -> (i32, i32) {
    %c0_i32 = arith.constant 0 : i32
    %c0_i32_0 = arith.constant 0 : i32
    %c0_i32_1 = arith.constant 0 : i32
    return %c0_i32, %c0_i32_0 : i32, i32
  }
  func.func @transform_4(%arg0: i32) -> (i32, i32) {
    %c0_i32 = arith.constant 0 : i32
    %c0_i32_0 = arith.constant 0 : i32
    %c0_i32_1 = arith.constant 0 : i32
    return %c0_i32, %c0_i32_0 : i32, i32
  }
  func.func @transform_5(%arg0: i32) -> (i32, i32) {
    %c0_i32 = arith.constant 0 : i32
    %c0_i32_0 = arith.constant 0 : i32
    return %arg0, %c0_i32 : i32, i32
  }
}

</mosaic_0001>

<bundles_post_ra>
// kernel: tpu_custom_call.1
= control target key start
LH: loop header
LB: loop body
LE: loop exit
PB: predicated region body
PF: predicated region fallthrough
CT: control target
= control target key end

     0   :  { %10 = vsyncpa [#allocation4], 0  ;;  %s755_s0 = inlined_call_operand.hbm [shape: f32[8,121], index: 0, kind: input, shape index: {}]   ;;  %s756_s1 = inlined_call_operand.hbm [shape: bf16[128,256], index: 1, kind: input, shape index: {}]   ;;  %s757_s2 = inlined_call_operand.hbm [shape: f32[1,256], index: 2, kind: input, shape index: {}]   ;;  %s758_s3 = inlined_call_operand.hbm [shape: bf16[256,121], index: 3, kind: input, shape index: {}]   ;;  %s759_s4 = inlined_call_operand.vmem [shape: f32[1,121], index: 4, kind: input, shape index: {}]   ;;  %s760_s5 = inlined_call_operand.hbm [shape: f32[8,121], index: 5, kind: output, shape index: {}]  }
   0x1   :  { %11 = vsyncpa [#allocation7], 0 }
   0x2   :  { %12 = vsyncpa [#allocation10], 0  ;;  %s29_s20 = sshll.u32 %s756_s1, 4  ;;  %s30_s20 = int_to_ptr.hbm [resolvable:$true] %s29_s20 }
   0x3   :  { %13 = vsyncpa [#allocation5], 0  ;;  %s695_s21 = smov [#allocation6]   ;;  %s19_s25 = sshll.u32 %s755_s0, 4  ;;  %s20_s25 = int_to_ptr.hbm [resolvable:$true] %s19_s25 }
   0x4   :  { %s31_s22 = sshll.u32 %s695_s21, 4  ;;  %s696_s26 = smov 128   ;;  %s32_s22 = int_to_ptr.vmem [resolvable:$true] %s31_s22 }
   0x5   :  { %s697_s27 = smov 8   ;;  %s698_s28 = smov [#allocation3]  }
   0x6   :  { %37 = dma.hbm_to_vmem [thread:$0]  %s30_s20, 2048, %s32_s22, [#allocation7], %s696_s26, %s696_s26, %s697_s27  }
   0x7   :  { %s21_s29 = sshll.u32 %s698_s28, 4  ;;  %s43_s7 = sshll.u32 %s757_s2, 4  ;;  %s22_s29 = int_to_ptr.vmem [resolvable:$true] %s21_s29  ;;  %s44_s7 = int_to_ptr.hbm [resolvable:$true] %s43_s7 }
   0x8   :  { %24 = dma.hbm_to_vmem [thread:$0]  %s20_s25, 128, %s22_s29, [#allocation4]  }
   0x9   :  { %s53_s9 = sshll.u32 %s758_s3, 4  ;;  %s699_s10 = smov [#allocation8]   ;;  %s54_s9 = int_to_ptr.hbm [resolvable:$true] %s53_s9 }
   0xa   :  { %s45_s11 = sshll.u32 %s699_s10, 4  ;;  %s700_s0 = smov [#allocation9]   ;;  %s46_s11 = int_to_ptr.vmem [resolvable:$true] %s45_s11 }
   0xb   :  { %48 = dma.hbm_to_vmem [thread:$0]  %s44_s7, 32, %s46_s11, [#allocation7]  }
   0xc   :  { %s55_s12 = sshll.u32 %s700_s0, 4  ;;  %s701_s13 = smov 64   ;;  %s56_s12 = int_to_ptr.vmem [resolvable:$true] %s55_s12 }
   0xd   :  { %s702_s14 = smov 4  }
   0xe   :  { %61 = dma.hbm_to_vmem [thread:$0]  %s54_s9, 2048, %s56_s12, [#allocation10], %s701_s13, %s701_s13, %s702_s14  }
   0xf   :  { %687 = dma.done.wait [#allocation4], 128  }
  0x10   :  { %688 = vsyncadd [#allocation4], 4294967168 }
  0x11   :  { %689 = dma.done.wait [#allocation7], 2080  }
  0x12   :  { %690 = vsyncadd [#allocation7], 4294965216 }
  0x13   :  { %691 = dma.done.wait [#allocation10], 2048  }
  0x14   :  { %692 = vsyncadd [#allocation10], 4294965248  ;;  %v703_v0 = vmov 0.0   ;;  %v454_v1 = vld [vmem:[#allocation6 + $0x70] sm:$0xf]  ;;  %vm82_vm0 = vcmask 990208  }
  0x15   :  { %80 = vst [vmem:[#allocation2] sm:$0xff] %v703_v0  ;;  %v539_v2 = vld [vmem:[#allocation6 + $0x74] sm:$0xf0]  ;;  %v538_v3 = vld [vmem:[#allocation6 + $0x74] sm:$0xf]  ;;  %v545_v40 = vld [vmem:[#allocation9 + $0x28] sm:$0xff] }
  0x16   :  { %v455_v4 = vor.u32 %v539_v2, %v454_v1  ;;  %v456_v5 = vld [vmem:[#allocation6 + $0x78] sm:$0xf0]  ;;  %v446_v6 = vld [vmem:[#allocation6 + $0x60] sm:$0xf]  ;;  %v537_v7 = vld [vmem:[#allocation6 + $0x64] sm:$0xf0] }
  0x17   :  { %v459_v8 = vor.u32 %v538_v3, %v456_v5  ;;  %v536_v9 = vld [vmem:[#allocation6 + $0x64] sm:$0xf]  ;;  %v448_v10 = vld [vmem:[#allocation6 + $0x68] sm:$0xf0]  ;;  %v447_v11 = vor.u32 %v537_v7, %v446_v6  ;;  %v438_v13 = vld [vmem:[#allocation6 + $0x50] sm:$0xf] }
  0x18   :  { %188 = vmatpush.bf16.msra.mxu0 %v455_v4  ;;  %v451_v12 = vor.u32 %v536_v9, %v448_v10  ;;  %v535_v14 = vld [vmem:[#allocation6 + $0x54] sm:$0xf0]  ;;  %v534_v15 = vld [vmem:[#allocation6 + $0x54] sm:$0xf]  ;;  %v440_v16 = vld [vmem:[#allocation6 + $0x58] sm:$0xf0] }
  0x19   :  { %201 = vmatpush.bf16.msra.mxu1 %v459_v8  ;;  %v439_v17 = vor.u32 %v535_v14, %v438_v13  ;;  %v443_v18 = vor.u32 %v534_v15, %v440_v16  ;;  %v430_v19 = vld [vmem:[#allocation6 + $0x40] sm:$0xf]  ;;  %v533_v20 = vld [vmem:[#allocation6 + $0x44] sm:$0xf0]  ;;  %v532_v21 = vld [vmem:[#allocation6 + $0x44] sm:$0xf] }
  0x1a   :  { %v432_v22 = vld [vmem:[#allocation6 + $0x48] sm:$0xf0]  ;;  %v81_v23 = vld [vmem:[#allocation3] sm:$0xff]  ;;  %v431_v24 = vor.u32 %v533_v20, %v430_v19  ;;  %v422_v28 = vld [vmem:[#allocation6 + $0x30] sm:$0xf]  ;;  %s704_s15 = smov [#allocation11]  }
  0x1b   :  { %83 = vst.msk [vmem:[#allocation2] sm:$0xff] %vm82_vm0, %v81_v23  ;;  %v547_v25 = vld [vmem:[#allocation9 + $0x38] sm:$0xff]  ;;  %v435_v27 = vor.u32 %v532_v21, %v432_v22  ;;  %v530_v30 = vld [vmem:[#allocation6 + $0x34] sm:$0xf]  ;;  %v529_v37 = vld [vmem:[#allocation6 + $0x24] sm:$0xf0] }
  0x1c   :  { %189 = vmatpush.bf16.msra.mxu0 %v447_v11  ;;  %v555_v26 = vld [vmem:[#allocation9 + $0x78] sm:$0xff]  ;;  %350 = vmatpush.bf16.msra.mxu2 %v547_v25  ;;  %v546_v32 = vld [vmem:[#allocation9 + $0x30] sm:$0xff]  ;;  %v528_v38 = vld [vmem:[#allocation6 + $0x24] sm:$0xf]  ;;  %s382_s16 = sshll.u32 %s704_s15, 4  ;;  %s384_s19 = sshll.u32 %s760_s5, 4  ;;  %s383_s16 = int_to_ptr.vmem [resolvable:$true] %s382_s16  ;;  %s385_s19 = int_to_ptr.hbm [resolvable:$true] %s384_s19 }
  0x1d   :  { %202 = vmatpush.bf16.msra.mxu1 %v451_v12  ;;  %v531_v29 = vld [vmem:[#allocation6 + $0x34] sm:$0xf0]  ;;  %v424_v31 = vld [vmem:[#allocation6 + $0x38] sm:$0xf0]  ;;  %363 = vmatpush.bf16.msra.mxu3 %v555_v26  ;;  %v414_v36 = vld [vmem:[#allocation6 + $0x20] sm:$0xf] }
  0x1e   :  { %v554_v33 = vld [vmem:[#allocation9 + $0x70] sm:$0xff]  ;;  %v423_v34 = vor.u32 %v531_v29, %v422_v28  ;;  %v427_v35 = vor.u32 %v530_v30, %v424_v31  ;;  %v416_v39 = vld [vmem:[#allocation6 + $0x28] sm:$0xf0]  ;;  %v415_v42 = vor.u32 %v529_v37, %v414_v36  ;;  %v408_v47 = vld [vmem:[#allocation6 + $0x18] sm:$0xf0] }
  0x1f   :  { %v553_v41 = vld [vmem:[#allocation9 + $0x68] sm:$0xff]  ;;  %v419_v43 = vor.u32 %v528_v38, %v416_v39  ;;  %v527_v45 = vld [vmem:[#allocation6 + $0x14] sm:$0xf0]  ;;  %v526_v46 = vld [vmem:[#allocation6 + $0x14] sm:$0xf] }
  0x20   :  { %190 = vmatpush.bf16.msra.mxu0 %v439_v17  ;;  %351 = vmatpush.bf16.msra.mxu2 %v546_v32  ;;  %v406_v44 = vld [vmem:[#allocation6 + $0x10] sm:$0xf]  ;;  %v544_v48 = vld [vmem:[#allocation9 + $0x20] sm:$0xff]  ;;  %v411_v51 = vor.u32 %v526_v46, %v408_v47  ;;  %v400_v55 = vld [vmem:[#allocation6 + $0x8] sm:$0xf0] }
  0x21   :  { %203 = vmatpush.bf16.msra.mxu1 %v443_v18  ;;  %364 = vmatpush.bf16.msra.mxu3 %v554_v33  ;;  %v552_v49 = vld [vmem:[#allocation9 + $0x60] sm:$0xff]  ;;  %v407_v50 = vor.u32 %v527_v45, %v406_v44  ;;  %v543_v56 = vld [vmem:[#allocation9 + $0x18] sm:$0xff]  ;;  %v542_v61 = vld [vmem:[#allocation9 + $0x10] sm:$0xff] }
  0x22   :  { %v398_v52 = vld [vmem:[#allocation6] sm:$0xf]  ;;  %v525_v53 = vld [vmem:[#allocation6 + $0x4] sm:$0xf0]  ;;  %v524_v54 = vld [vmem:[#allocation6 + $0x4] sm:$0xf] }
  0x23   :  { %v551_v57 = vld [vmem:[#allocation9 + $0x58] sm:$0xff]  ;;  %v399_v58 = vor.u32 %v525_v53, %v398_v52  ;;  %v84_v59 = vld [vmem:[#allocation2] sm:$0xff]  ;;  %v403_v60 = vor.u32 %v524_v54, %v400_v55  ;;  %v540_v2 = vld [vmem:[#allocation9] sm:$0xff] }
  0x24   :  { %191 = vmatpush.bf16.msra.mxu0 %v431_v24  ;;  %352 = vmatpush.bf16.msra.mxu2 %v545_v40  ;;  %v550_v62 = vld [vmem:[#allocation9 + $0x50] sm:$0xff]  ;;  %v85_v63 = vpack.c.bf16 %v84_v59, %v84_v59  ;;  %v541_v0 = vld [vmem:[#allocation9 + $0x8] sm:$0xff]  ;;  %v548_v3 = vld [vmem:[#allocation9 + $0x40] sm:$0xff] }
  0x25   :  { %204 = vmatpush.bf16.msra.mxu1 %v435_v27  ;;  %365 = vmatpush.bf16.msra.mxu3 %v553_v41  ;;  %v549_v1 = vld [vmem:[#allocation9 + $0x48] sm:$0xff]  ;;  %v102_v4 = vld [vmem:[#allocation8] sm:$0x3] }
  0x26   :  { %v104_v5 = vperm.slane %v102_v4, 0  ;;  %v105_v6 = vperm.slane %v102_v4, 1  ;;  %v566_v17 = vld [vmem:[%s759_s4] ss:$0 sm:$0xff] }
  0x28   :  { %192 = vmatpush.bf16.msra.mxu0 %v423_v34  ;;  %353 = vmatpush.bf16.msra.mxu2 %v544_v48 }
  0x29   :  { %205 = vmatpush.bf16.msra.mxu1 %v427_v35  ;;  %366 = vmatpush.bf16.msra.mxu3 %v552_v49 }
  0x2c   :  { %193 = vmatpush.bf16.msra.mxu0 %v415_v42  ;;  %354 = vmatpush.bf16.msra.mxu2 %v543_v56 }
  0x2d   :  { %206 = vmatpush.bf16.msra.mxu1 %v419_v43  ;;  %367 = vmatpush.bf16.msra.mxu3 %v551_v57 }
  0x30   :  { %194 = vmatpush.bf16.msra.mxu0 %v407_v50  ;;  %355 = vmatpush.bf16.msra.mxu2 %v542_v61 }
  0x31   :  { %207 = vmatpush.bf16.msra.mxu1 %v411_v51  ;;  %368 = vmatpush.bf16.msra.mxu3 %v550_v62 }
  0x34   :  { %195 = vmatpush.bf16.msra.mxu0 %v399_v58  ;;  %356 = vmatpush.bf16.msra.mxu2 %v541_v0 }
  0x35   :  { %208 = vmatpush.bf16.msra.mxu1 %v403_v60  ;;  %369 = vmatpush.bf16.msra.mxu3 %v549_v1 }
  0x37   :  { %196 = vmatmul.bf16.vlgmr.msra.gmra.mxu0 %v85_v63 }
  0x38   :  { %209 = vmatmul.bf16.vlgmr.msra.gmra.mxu1 %v85_v63  ;;  %357 = vmatpush.bf16.msra.mxu2 %v540_v2 }
  0x39   :  { %370 = vmatpush.bf16.msra.mxu3 %v548_v3 }
  0xb4   :  { %v197_v7 = vpop.f32.mrf.mxu0 }
  0xb5   :  { %v198_v8 = vadd.f32 %v197_v7, %v104_v5  ;;  %v210_v9 = vpop.f32.mrf.mxu1 }
  0xb6   :  { %v211_v10 = vadd.f32 %v210_v9, %v105_v6 }
  0xb7   :  { %v214_v11 = vmax.f32 %v198_v8, 0.0 }
  0xb8   :  { %v215_v12 = vmax.f32 %v211_v10, 0.0 }
  0xb9   :  { %v216_v13 = vpack.c.bf16 %v214_v11, %v214_v11 }
  0xba   :  { %v217_v14 = vpack.c.bf16 %v215_v12, %v215_v12 }
  0xbb   :  { %358 = vmatmul.bf16.vlgmr.msra.gmra.mxu2 %v216_v13 }
  0xbc   :  { %371 = vmatmul.bf16.vlgmr.msra.gmra.mxu3 %v217_v14  ;;  %v199_v15 = vpop.f32.mrf.mxu0 }
  0xbd   :  { %v212_v16 = vpop.f32.mrf.mxu1 }
 0x13e   :  { %v359_v18 = vpop.f32.mrf.mxu2 }
 0x13f   :  { %v360_v19 = vadd.f32 %v566_v17, %v359_v18  ;;  %v372_v20 = vpop.f32.mrf.mxu3 }
 0x141   :  { %v373_v21 = vadd.f32 %v372_v20, %v360_v19 }
 0x143   :  { %376 = vst.msk [vmem:[#allocation11] sm:$0xff] %vm82_vm0, %v373_v21 }
 0x144   :  { %387 = dma.vmem_to_hbm [thread:$0]  %s383_s16, 128, %s385_s19, [#allocation5]  }
 0x146   :  { %v361_v22 = vpop.f32.mrf.mxu2 }
 0x147   :  { %v374_v23 = vpop.f32.mrf.mxu3 }
 0x148   :  { %693 = dma.done.wait [#allocation5], 128  }
 0x149   :  { %694 = vsyncadd [#allocation5], 4294967168 }
 0x14a   :  { %392 = vsyncpa [#allocation4], 1 }
 0x14b   :  { %393 = vsyncpa [#allocation7], 1 }
 0x14c   :  { %394 = vsyncpa [#allocation10], 1 }
 0x14d   :  { %395 = vsyncpa [#allocation5], 1 }

</bundles_post_ra>
